<compile_context>
chip_gen: v7x
topology: tpu7x:2x2x1
jax: 0.10.0
libtpu: 0.0.40
codegen_flags: <defaults>
</compile_context>

<pallas_src>
from functools import partial

import jax
import jax.numpy as jnp
from jax.experimental import pallas as pl
from jax.experimental.pallas import tpu as pltpu


LANE = 128


def _round_up(x, m):
    return (x + m - 1) // m * m


# ------------------------------ fused kernel -------------------------------

def _fused_appnp_kernel(*refs, num_layers, alpha, tm):
    # refs = x, adj, w0, b0, ..., w_{L-1}, b_{L-1}, out, h0_sc, ha_sc, hb_sc
    x_ref = refs[0]
    adj_ref = refs[1]
    wb = refs[2:2 + 2 * num_layers]
    o_ref = refs[2 + 2 * num_layers]
    h0_sc, ha_sc, hb_sc = refs[2 + 2 * num_layers + 1:]

    p = pl.program_id(0)                       # phase: 0 = MLP, 1..k = prop step
    t = pl.program_id(1)                       # row tile over the N nodes
    row0 = pl.multiple_of(t * tm, tm)

    # -------- phase 0: fused MLP (all Linear layers) for rows [row0, row0+tm)
    @pl.when(p == 0)
    def _mlp():
        h = x_ref[...].astype(jnp.float32)
        for i in range(num_layers):
            w = wb[2 * i][...]
            b = wb[2 * i + 1][...]                      # (1, Fout_pad), resident
            h = jnp.dot(h.astype(jnp.bfloat16), w.astype(jnp.bfloat16),
                        preferred_element_type=jnp.float32) + b
            if i < num_layers - 1:
                h = jnp.maximum(h, 0.0)                 # ReLU in f32 (VPU)
        h0_sc[pl.ds(row0, tm), :] = alpha * h           # pre-scaled teleport term
        ha_sc[pl.ds(row0, tm), :] = h                   # current h lives in buf A
        o_ref[...] = h.astype(o_ref.dtype)

    # -------- phases 1..k: h <- (1 - alpha) * (A_hat @ h) + alpha * h0
    def _prop_step(h_src, h_dst):
        adj = adj_ref[...]                              # (tm, N) bf16 row stripe
        prod = jnp.dot(adj, h_src[...].astype(jnp.bfloat16),
                       preferred_element_type=jnp.float32)
        h_new = (1.0 - alpha) * prod + h0_sc[pl.ds(row0, tm), :]
        h_dst[pl.ds(row0, tm), :] = h_new
        o_ref[...] = h_new.astype(o_ref.dtype)          # final phase wins in HBM

    @pl.when(jnp.logical_and(p > 0, p % 2 == 1))        # odd step: A -> B
    def _():
        _prop_step(ha_sc, hb_sc)

    @pl.when(jnp.logical_and(p > 0, p % 2 == 0))        # even step: B -> A
    def _():
        _prop_step(hb_sc, ha_sc)


# ------------------------------ APPNP wrapper ------------------------------

def appnp_forward(features, weights, biases, adj_norm, *, alpha, k, tm=None):
    """weights[i]: (Fin_i, Fout_i), biases[i]: (Fout_i,); adj_norm: (N, N)."""
    N, in_feats = features.shape
    num_layers = len(weights)
    n_classes = weights[-1].shape[1]

    # Lane-pad every feature/class dim to a multiple of 128 (zero padding keeps
    # the math exact; padded output columns are sliced off below).
    dims = [in_feats] + [w.shape[1] for w in weights]
    pdims = [_round_up(d, LANE) for d in dims]
    cp = pdims[-1]

    xp = jnp.zeros((N, pdims[0]), jnp.float32).at[:, :in_feats].set(features)
    wps, bps = [], []
    for i, (w, b) in enumerate(zip(weights, biases)):
        wp = jnp.zeros((pdims[i], pdims[i + 1]), jnp.float32)
        wp = wp.at[:w.shape[0], :w.shape[1]].set(w)
        bp = jnp.zeros((1, pdims[i + 1]), jnp.float32).at[0, :b.shape[0]].set(b)
        wps.append(wp)
        bps.append(bp)

    # bf16 adjacency in HBM: halves the dominant memory term and feeds the MXU.
    adj_bf16 = adj_norm.astype(jnp.bfloat16)

    if tm is None:
        tm = min(N, 256)
    assert N % tm == 0 and tm % 8 == 0
    n_tiles = N // tm

    in_specs = [
        pl.BlockSpec((tm, pdims[0]), lambda p, t: (t, 0)),   # x row tile
        pl.BlockSpec((tm, N), lambda p, t: (t, 0)),          # adjacency row stripe
    ]
    for i in range(num_layers):
        in_specs.append(pl.BlockSpec((pdims[i], pdims[i + 1]),
                                     lambda p, t: (0, 0)))   # weight (resident)
        in_specs.append(pl.BlockSpec((1, pdims[i + 1]),
                                     lambda p, t: (0, 0)))   # bias (resident)

    kernel = partial(_fused_appnp_kernel, num_layers=num_layers,
                     alpha=alpha, tm=tm)

    out_padded = pl.pallas_call(
        kernel,
        out_shape=jax.ShapeDtypeStruct((N, cp), jnp.float32),
        grid_spec=pltpu.PrefetchScalarGridSpec(
            num_scalar_prefetch=0,
            grid=(k + 1, n_tiles),
            in_specs=in_specs,
            out_specs=pl.BlockSpec((tm, cp), lambda p, t: (t, 0)),
            scratch_shapes=[
                pltpu.VMEM((N, cp), jnp.float32),   # alpha * h0 (teleport term)
                pltpu.VMEM((N, cp), jnp.float32),   # h ping buffer
                pltpu.VMEM((N, cp), jnp.float32),   # h pong buffer
            ],
        ),
        compiler_params=pltpu.CompilerParams(
            # Phase p+1 reads h written by every row tile of phase p, so both
            # axes must stay sequential (no megacore sharding of the tile axis).
            dimension_semantics=("arbitrary", "arbitrary"),
            vmem_limit_bytes=32 << 20,
        ),
    )(xp, adj_bf16, *[a for pair in zip(wps, bps) for a in pair])

    return out_padded[:, :n_classes]


# ------------------------------ test fixtures ------------------------------

def make_params(key, in_feats, n_hidden, n_layers, n_classes):
    """Deterministic Linear params; shapes match nn.Linear(in, out) -> W^T."""
    dims = [in_feats] + [n_hidden] * n_layers + [n_classes]
    weights, biases = [], []
    for i in range(len(dims) - 1):
        fin, fout = dims[i], dims[i + 1]
        key, kw, kb = jax.random.split(key, 3)
        bound = 1.0 / jnp.sqrt(fin)
        weights.append(jax.random.uniform(kw, (fin, fout), jnp.float32,
                                          -bound, bound))
        biases.append(jax.random.uniform(kb, (fout,), jnp.float32,
                                         -bound, bound))
    return weights, biases


def make_normalized_adj(key, n_nodes):
    """Dense symmetric random graph with D^{-1/2} A D^{-1/2} normalization."""
    a = jax.random.bernoulli(key, 0.2, (n_nodes, n_nodes)).astype(jnp.float32)
    a = jnp.maximum(a, a.T)                      # symmetric
    a = a * (1.0 - jnp.eye(n_nodes))             # no self loops (DGL default)
    deg = jnp.clip(a.sum(axis=1), 1.0, None)     # clamp like DGL (min degree 1)
    d_inv_sqrt = 1.0 / jnp.sqrt(deg)
    return a * d_inv_sqrt[:, None] * d_inv_sqrt[None, :]


# ----------------------------------- main -----------------------------------

if __name__ == "__main__":
    # small, APPNP-consistent shapes
    N_NODES = 64
    IN_FEATS = 32
    N_HIDDEN = 32
    N_LAYERS = 2          # -> Linear(32,32), Linear(32,32), Linear(32,16)
    N_CLASSES = 16
    ALPHA = 0.1
    K = 3

    key = jax.random.PRNGKey(0)
    k_feat, k_adj, k_par = jax.random.split(key, 3)

    features = jax.random.normal(k_feat, (N_NODES, IN_FEATS), jnp.float32)
    adj_norm = make_normalized_adj(k_adj, N_NODES)
    weights, biases = make_params(k_par, IN_FEATS, N_HIDDEN, N_LAYERS, N_CLASSES)

    out = appnp_forward(features, weights, biases, adj_norm,
                        alpha=ALPHA, k=K, tm=32)   # tm=32 -> 2 row tiles
    out = jax.block_until_ready(out)

    assert out.shape == (N_NODES, N_CLASSES)
    assert jnp.all(jnp.isfinite(out))
    print("KERNEL_OK")
</pallas_src>

<mosaic_0001>
module attributes {stable_mosaic.version = 11 : i64} {
  func.func @_fused_appnp_kernel(%arg0: i32, %arg1: i32, %arg2: memref<32x128xf32, #tpu.memory_space<vmem>>, %arg3: memref<32x64xbf16, #tpu.memory_space<vmem>>, %arg4: memref<128x128xf32, #tpu.memory_space<vmem>>, %arg5: memref<1x128xf32, #tpu.memory_space<vmem>>, %arg6: memref<128x128xf32, #tpu.memory_space<vmem>>, %arg7: memref<1x128xf32, #tpu.memory_space<vmem>>, %arg8: memref<128x128xf32, #tpu.memory_space<vmem>>, %arg9: memref<1x128xf32, #tpu.memory_space<vmem>>, %arg10: memref<32x128xf32, #tpu.memory_space<vmem>>, %arg11: memref<64x128xf32, #tpu.memory_space<vmem>>, %arg12: memref<64x128xf32, #tpu.memory_space<vmem>>, %arg13: memref<64x128xf32, #tpu.memory_space<vmem>>) attributes {dimension_semantics = [#tpu.dimension_semantics<arbitrary>, #tpu.dimension_semantics<arbitrary>], iteration_bounds = array<i64: 4, 2>, scalar_prefetch = 0 : i64, scratch_operands = 3 : i64, tpu.core_type = #tpu.core_type<tc>, window_params = [{transform_indices = @transform_0, window_bounds = array<i64: 32, 128>}, {transform_indices = @transform_1, window_bounds = array<i64: 32, 64>}, {pipeline_mode = #tpu.pipeline_mode<synchronous>, transform_indices = @transform_2, window_bounds = array<i64: 128, 128>}, {pipeline_mode = #tpu.pipeline_mode<synchronous>, transform_indices = @transform_3, window_bounds = array<i64: 1, 128>}, {pipeline_mode = #tpu.pipeline_mode<synchronous>, transform_indices = @transform_4, window_bounds = array<i64: 128, 128>}, {pipeline_mode = #tpu.pipeline_mode<synchronous>, transform_indices = @transform_5, window_bounds = array<i64: 1, 128>}, {pipeline_mode = #tpu.pipeline_mode<synchronous>, transform_indices = @transform_6, window_bounds = array<i64: 128, 128>}, {pipeline_mode = #tpu.pipeline_mode<synchronous>, transform_indices = @transform_7, window_bounds = array<i64: 1, 128>}, {transform_indices = @transform_8, window_bounds = array<i64: 32, 128>}]} {
    %c32_i32 = arith.constant 32 : i32
    %0 = arith.muli %arg1, %c32_i32 : i32
    %1 = tpu.assume_multiple %0, 32 : i32
    %c0_i32 = arith.constant 0 : i32
    %2 = arith.cmpi eq, %arg0, %c0_i32 : i32
    %3 = arith.extui %2 : i1 to i32
    %c0_i32_0 = arith.constant 0 : i32
    %4 = arith.cmpi ne, %3, %c0_i32_0 : i32
    scf.if %4 {
      %c0 = arith.constant 0 : index
      %c0_17 = arith.constant 0 : index
      %35 = vector.load %arg2[%c0, %c0_17] : memref<32x128xf32, #tpu.memory_space<vmem>>, vector<32x128xf32>
      %c0_18 = arith.constant 0 : index
      %c0_19 = arith.constant 0 : index
      %36 = vector.load %arg4[%c0_18, %c0_19] : memref<128x128xf32, #tpu.memory_space<vmem>>, vector<128x128xf32>
      %c0_20 = arith.constant 0 : index
      %c0_21 = arith.constant 0 : index
      %37 = vector.load %arg5[%c0_20, %c0_21] : memref<1x128xf32, #tpu.memory_space<vmem>>, vector<1x128xf32>
      %38 = arith.truncf %35 : vector<32x128xf32> to vector<32x128xbf16>
      %39 = arith.truncf %36 : vector<128x128xf32> to vector<128x128xbf16>
      %cst = arith.constant dense<0.000000e+00> : vector<32x128xf32>
      %40 = tpu.matmul %38, %39, %cst {dimension_numbers = #tpu.dot_dimension_numbers<[1], [0], [0], [1], [0, 0, 1, 1], [], []>} : vector<32x128xbf16>, vector<128x128xbf16>, vector<32x128xf32> -> vector<32x128xf32>
      %41 = vector.broadcast %37 : vector<1x128xf32> to vector<32x128xf32>
      %42 = arith.addf %40, %41 : vector<32x128xf32>
      %cst_22 = arith.constant 0.000000e+00 : f32
      %43 = vector.broadcast %cst_22 : f32 to vector<32x128xf32>
      %44 = arith.maximumf %42, %43 : vector<32x128xf32>
      %c0_23 = arith.constant 0 : index
      %c0_24 = arith.constant 0 : index
      %45 = vector.load %arg6[%c0_23, %c0_24] : memref<128x128xf32, #tpu.memory_space<vmem>>, vector<128x128xf32>
      %c0_25 = arith.constant 0 : index
      %c0_26 = arith.constant 0 : index
      %46 = vector.load %arg7[%c0_25, %c0_26] : memref<1x128xf32, #tpu.memory_space<vmem>>, vector<1x128xf32>
      %47 = arith.truncf %44 : vector<32x128xf32> to vector<32x128xbf16>
      %48 = arith.truncf %45 : vector<128x128xf32> to vector<128x128xbf16>
      %cst_27 = arith.constant dense<0.000000e+00> : vector<32x128xf32>
      %49 = tpu.matmul %47, %48, %cst_27 {dimension_numbers = #tpu.dot_dimension_numbers<[1], [0], [0], [1], [0, 0, 1, 1], [], []>} : vector<32x128xbf16>, vector<128x128xbf16>, vector<32x128xf32> -> vector<32x128xf32>
      %50 = vector.broadcast %46 : vector<1x128xf32> to vector<32x128xf32>
      %51 = arith.addf %49, %50 : vector<32x128xf32>
      %cst_28 = arith.constant 0.000000e+00 : f32
      %52 = vector.broadcast %cst_28 : f32 to vector<32x128xf32>
      %53 = arith.maximumf %51, %52 : vector<32x128xf32>
      %c0_29 = arith.constant 0 : index
      %c0_30 = arith.constant 0 : index
      %54 = vector.load %arg8[%c0_29, %c0_30] : memref<128x128xf32, #tpu.memory_space<vmem>>, vector<128x128xf32>
      %c0_31 = arith.constant 0 : index
      %c0_32 = arith.constant 0 : index
      %55 = vector.load %arg9[%c0_31, %c0_32] : memref<1x128xf32, #tpu.memory_space<vmem>>, vector<1x128xf32>
      %56 = arith.truncf %53 : vector<32x128xf32> to vector<32x128xbf16>
      %57 = arith.truncf %54 : vector<128x128xf32> to vector<128x128xbf16>
      %cst_33 = arith.constant dense<0.000000e+00> : vector<32x128xf32>
      %58 = tpu.matmul %56, %57, %cst_33 {dimension_numbers = #tpu.dot_dimension_numbers<[1], [0], [0], [1], [0, 0, 1, 1], [], []>} : vector<32x128xbf16>, vector<128x128xbf16>, vector<32x128xf32> -> vector<32x128xf32>
      %59 = vector.broadcast %55 : vector<1x128xf32> to vector<32x128xf32>
      %60 = arith.addf %58, %59 : vector<32x128xf32>
      %cst_34 = arith.constant 1.000000e-01 : f32
      %61 = vector.broadcast %cst_34 : f32 to vector<32x128xf32>
      %62 = arith.mulf %61, %60 : vector<32x128xf32>
      %63 = arith.index_cast %1 : i32 to index
      %c0_35 = arith.constant 0 : index
      %64 = vector.load %arg11[%63, %c0_35] : memref<64x128xf32, #tpu.memory_space<vmem>>, vector<32x128xf32>
      tpu.vector_store %arg11[%63, %c0_35], %62 {strides = array<i32>} : memref<64x128xf32, #tpu.memory_space<vmem>>, vector<32x128xf32>,
      %65 = arith.index_cast %1 : i32 to index
      %c0_36 = arith.constant 0 : index
      %66 = vector.load %arg12[%65, %c0_36] : memref<64x128xf32, #tpu.memory_space<vmem>>, vector<32x128xf32>
      tpu.vector_store %arg12[%65, %c0_36], %60 {strides = array<i32>} : memref<64x128xf32, #tpu.memory_space<vmem>>, vector<32x128xf32>,
      %c0_37 = arith.constant 0 : index
      %c0_38 = arith.constant 0 : index
      %67 = vector.load %arg10[%c0_37, %c0_38] : memref<32x128xf32, #tpu.memory_space<vmem>>, vector<32x128xf32>
      tpu.vector_store %arg10[%c0_37, %c0_38], %60 {strides = array<i32>} : memref<32x128xf32, #tpu.memory_space<vmem>>, vector<32x128xf32>,
    } else {
    }
    %c0_i32_1 = arith.constant 0 : i32
    %5 = arith.cmpi sgt, %arg0, %c0_i32_1 : i32
    %c2_i32 = arith.constant 2 : i32
    %c0_i32_2 = arith.constant 0 : i32
    %6 = arith.cmpi eq, %c2_i32, %c0_i32_2 : i32
    %c1_i32 = arith.constant 1 : i32
    %7 = arith.select %6, %c1_i32, %c2_i32 : i32
    %8 = arith.remsi %arg0, %7 : i32
    %c0_i32_3 = arith.constant 0 : i32
    %9 = arith.cmpi ne, %8, %c0_i32_3 : i32
    %c0_i32_4 = arith.constant 0 : i32
    %10 = arith.cmpi slt, %8, %c0_i32_4 : i32
    %c0_i32_5 = arith.constant 0 : i32
    %11 = arith.cmpi slt, %7, %c0_i32_5 : i32
    %12 = arith.xori %10, %11 : i1
    %13 = arith.andi %12, %9 : i1
    %14 = arith.addi %8, %7 : i32
    %15 = arith.select %13, %14, %8 : i32
    %c1_i32_6 = arith.constant 1 : i32
    %16 = arith.cmpi eq, %15, %c1_i32_6 : i32
    %17 = arith.andi %5, %16 : i1
    %18 = arith.extui %17 : i1 to i32
    %c0_i32_7 = arith.constant 0 : i32
    %19 = arith.cmpi ne, %18, %c0_i32_7 : i32
    scf.if %19 {
      %c0 = arith.constant 0 : index
      %c0_17 = arith.constant 0 : index
      %35 = vector.load %arg3[%c0, %c0_17] : memref<32x64xbf16, #tpu.memory_space<vmem>>, vector<32x64xbf16>
      %c0_18 = arith.constant 0 : index
      %c0_19 = arith.constant 0 : index
      %36 = vector.load %arg12[%c0_18, %c0_19] : memref<64x128xf32, #tpu.memory_space<vmem>>, vector<64x128xf32>
      %37 = arith.truncf %36 : vector<64x128xf32> to vector<64x128xbf16>
      %cst = arith.constant dense<0.000000e+00> : vector<32x128xf32>
      %38 = tpu.matmul %35, %37, %cst {dimension_numbers = #tpu.dot_dimension_numbers<[1], [0], [0], [1], [0, 0, 1, 1], [], []>} : vector<32x64xbf16>, vector<64x128xbf16>, vector<32x128xf32> -> vector<32x128xf32>
      %cst_20 = arith.constant 0.899999976 : f32
      %39 = vector.broadcast %cst_20 : f32 to vector<32x128xf32>
      %40 = arith.mulf %39, %38 : vector<32x128xf32>
      %41 = arith.index_cast %1 : i32 to index
      %c0_21 = arith.constant 0 : index
      %42 = vector.load %arg11[%41, %c0_21] : memref<64x128xf32, #tpu.memory_space<vmem>>, vector<32x128xf32>
      %43 = arith.addf %40, %42 : vector<32x128xf32>
      %44 = arith.index_cast %1 : i32 to index
      %c0_22 = arith.constant 0 : index
      %45 = vector.load %arg13[%44, %c0_22] : memref<64x128xf32, #tpu.memory_space<vmem>>, vector<32x128xf32>
      tpu.vector_store %arg13[%44, %c0_22], %43 {strides = array<i32>} : memref<64x128xf32, #tpu.memory_space<vmem>>, vector<32x128xf32>,
      %c0_23 = arith.constant 0 : index
      %c0_24 = arith.constant 0 : index
      %46 = vector.load %arg10[%c0_23, %c0_24] : memref<32x128xf32, #tpu.memory_space<vmem>>, vector<32x128xf32>
      tpu.vector_store %arg10[%c0_23, %c0_24], %43 {strides = array<i32>} : memref<32x128xf32, #tpu.memory_space<vmem>>, vector<32x128xf32>,
    } else {
    }
    %c0_i32_8 = arith.constant 0 : i32
    %20 = arith.cmpi sgt, %arg0, %c0_i32_8 : i32
    %c2_i32_9 = arith.constant 2 : i32
    %c0_i32_10 = arith.constant 0 : i32
    %21 = arith.cmpi eq, %c2_i32_9, %c0_i32_10 : i32
    %c1_i32_11 = arith.constant 1 : i32
    %22 = arith.select %21, %c1_i32_11, %c2_i32_9 : i32
    %23 = arith.remsi %arg0, %22 : i32
    %c0_i32_12 = arith.constant 0 : i32
    %24 = arith.cmpi ne, %23, %c0_i32_12 : i32
    %c0_i32_13 = arith.constant 0 : i32
    %25 = arith.cmpi slt, %23, %c0_i32_13 : i32
    %c0_i32_14 = arith.constant 0 : i32
    %26 = arith.cmpi slt, %22, %c0_i32_14 : i32
    %27 = arith.xori %25, %26 : i1
    %28 = arith.andi %27, %24 : i1
    %29 = arith.addi %23, %22 : i32
    %30 = arith.select %28, %29, %23 : i32
    %c0_i32_15 = arith.constant 0 : i32
    %31 = arith.cmpi eq, %30, %c0_i32_15 : i32
    %32 = arith.andi %20, %31 : i1
    %33 = arith.extui %32 : i1 to i32
    %c0_i32_16 = arith.constant 0 : i32
    %34 = arith.cmpi ne, %33, %c0_i32_16 : i32
    scf.if %34 {
      %c0 = arith.constant 0 : index
      %c0_17 = arith.constant 0 : index
      %35 = vector.load %arg3[%c0, %c0_17] : memref<32x64xbf16, #tpu.memory_space<vmem>>, vector<32x64xbf16>
      %c0_18 = arith.constant 0 : index
      %c0_19 = arith.constant 0 : index
      %36 = vector.load %arg13[%c0_18, %c0_19] : memref<64x128xf32, #tpu.memory_space<vmem>>, vector<64x128xf32>
      %37 = arith.truncf %36 : vector<64x128xf32> to vector<64x128xbf16>
      %cst = arith.constant dense<0.000000e+00> : vector<32x128xf32>
      %38 = tpu.matmul %35, %37, %cst {dimension_numbers = #tpu.dot_dimension_numbers<[1], [0], [0], [1], [0, 0, 1, 1], [], []>} : vector<32x64xbf16>, vector<64x128xbf16>, vector<32x128xf32> -> vector<32x128xf32>
      %cst_20 = arith.constant 0.899999976 : f32
      %39 = vector.broadcast %cst_20 : f32 to vector<32x128xf32>
      %40 = arith.mulf %39, %38 : vector<32x128xf32>
      %41 = arith.index_cast %1 : i32 to index
      %c0_21 = arith.constant 0 : index
      %42 = vector.load %arg11[%41, %c0_21] : memref<64x128xf32, #tpu.memory_space<vmem>>, vector<32x128xf32>
      %43 = arith.addf %40, %42 : vector<32x128xf32>
      %44 = arith.index_cast %1 : i32 to index
      %c0_22 = arith.constant 0 : index
      %45 = vector.load %arg12[%44, %c0_22] : memref<64x128xf32, #tpu.memory_space<vmem>>, vector<32x128xf32>
      tpu.vector_store %arg12[%44, %c0_22], %43 {strides = array<i32>} : memref<64x128xf32, #tpu.memory_space<vmem>>, vector<32x128xf32>,
      %c0_23 = arith.constant 0 : index
      %c0_24 = arith.constant 0 : index
      %46 = vector.load %arg10[%c0_23, %c0_24] : memref<32x128xf32, #tpu.memory_space<vmem>>, vector<32x128xf32>
      tpu.vector_store %arg10[%c0_23, %c0_24], %43 {strides = array<i32>} : memref<32x128xf32, #tpu.memory_space<vmem>>, vector<32x128xf32>,
    } else {
    }
    return
  }
  func.func @transform_0(%arg0: i32, %arg1: i32) -> (i32, i32) {
    %c0_i32 = arith.constant 0 : i32
    %c0_i32_0 = arith.constant 0 : i32
    return %arg1, %c0_i32 : i32, i32
  }
  func.func @transform_1(%arg0: i32, %arg1: i32) -> (i32, i32) {
    %c0_i32 = arith.constant 0 : i32
    %c0_i32_0 = arith.constant 0 : i32
    return %arg1, %c0_i32 : i32, i32
  }
  func.func @transform_2(%arg0: i32, %arg1: i32) -> (i32, i32) {
    %c0_i32 = arith.constant 0 : i32
    %c0_i32_0 = arith.constant 0 : i32
    %c0_i32_1 = arith.constant 0 : i32
    return %c0_i32, %c0_i32_0 : i32, i32
  }
  func.func @transform_3(%arg0: i32, %arg1: i32) -> (i32, i32) {
    %c0_i32 = arith.constant 0 : i32
    %c0_i32_0 = arith.constant 0 : i32
    %c0_i32_1 = arith.constant 0 : i32
    return %c0_i32, %c0_i32_0 : i32, i32
  }
  func.func @transform_4(%arg0: i32, %arg1: i32) -> (i32, i32) {
    %c0_i32 = arith.constant 0 : i32
    %c0_i32_0 = arith.constant 0 : i32
    %c0_i32_1 = arith.constant 0 : i32
    return %c0_i32, %c0_i32_0 : i32, i32
  }
  func.func @transform_5(%arg0: i32, %arg1: i32) -> (i32, i32) {
    %c0_i32 = arith.constant 0 : i32
    %c0_i32_0 = arith.constant 0 : i32
    %c0_i32_1 = arith.constant 0 : i32
    return %c0_i32, %c0_i32_0 : i32, i32
  }
  func.func @transform_6(%arg0: i32, %arg1: i32) -> (i32, i32) {
    %c0_i32 = arith.constant 0 : i32
    %c0_i32_0 = arith.constant 0 : i32
    %c0_i32_1 = arith.constant 0 : i32
    return %c0_i32, %c0_i32_0 : i32, i32
  }
  func.func @transform_7(%arg0: i32, %arg1: i32) -> (i32, i32) {
    %c0_i32 = arith.constant 0 : i32
    %c0_i32_0 = arith.constant 0 : i32
    %c0_i32_1 = arith.constant 0 : i32
    return %c0_i32, %c0_i32_0 : i32, i32
  }
  func.func @transform_8(%arg0: i32, %arg1: i32) -> (i32, i32) {
    %c0_i32 = arith.constant 0 : i32
    %c0_i32_0 = arith.constant 0 : i32
    return %arg1, %c0_i32 : i32, i32
  }
}

</mosaic_0001>

<bundles_post_ra>
// kernel: tpu_custom_call.1
= control target key start
LH: loop header
LB: loop body
LE: loop exit
PB: predicated region body
PF: predicated region fallthrough
CT: control target
= control target key end

     0   :  { %s2118_s0 = inlined_call_operand.hbm [shape: f32[64,128], index: 0, kind: input, shape index: {}]   ;;  %s2119_s1 = inlined_call_operand.hbm [shape: bf16[64,64], index: 1, kind: input, shape index: {}]   ;;  %s2120_s2 = inlined_call_operand.hbm [shape: f32[128,128], index: 2, kind: input, shape index: {}]   ;;  %s2121_s3 = inlined_call_operand.vmem [shape: f32[1,128], index: 3, kind: input, shape index: {}]   ;;  %s2122_s4 = inlined_call_operand.hbm [shape: f32[128,128], index: 4, kind: input, shape index: {}]   ;;  %s2123_s5 = inlined_call_operand.vmem [shape: f32[1,128], index: 5, kind: input, shape index: {}]   ;;  %s2124_s6 = inlined_call_operand.hbm [shape: f32[128,128], index: 6, kind: input, shape index: {}]   ;;  %s2125_s7 = inlined_call_operand.vmem [shape: f32[1,128], index: 7, kind: input, shape index: {}]   ;;  %s2126_s8 = inlined_call_operand.hbm [shape: f32[64,128], index: 8, kind: output, shape index: {}]  }
   0x1   :  { %2135 = sst [smem:[#allocation23_spill]] %s2118_s0 }
   0x2   :  { %2136 = sst [smem:[#allocation24_spill]] %s2120_s2 }
   0x3   :  { %2137 = sst [smem:[#allocation25_spill]] %s2121_s3 }
   0x4   :  { %2138 = sst [smem:[#allocation26_spill]] %s2122_s4 }
   0x5   :  { %2139 = sst [smem:[#allocation27_spill]] %s2123_s5 }
   0x6   :  { %2140 = sst [smem:[#allocation28_spill]] %s2124_s6 }
   0x7   :  { %2141 = sst [smem:[#allocation29_spill]] %s2125_s7 }
   0x8   :  { %2142 = sst [smem:[#allocation30_spill]] %s2126_s8 }
   0x9   :  { %13 = vsyncpa [#allocation6], 0 }
   0xa   :  { %15 = vsyncpa [#allocation6 + $0x1], 0 }
   0xb   :  { %16 = vsyncpa [#allocation9], 0 }
   0xc   :  { %18 = vsyncpa [#allocation9 + $0x1], 0 }
   0xd   :  { %19 = vsyncpa [#allocation12], 0 }
   0xe   :  { %20 = vsyncpa [#allocation7], 0 }
   0xf   :  { %22 = vsyncpa [#allocation7 + $0x1], 0  ;;  %s1703_s27 = smov 0   ;;  %s1705_s28 = smov 0  }
  0x10   :  { %s1707_s29 = smov 0   ;;  %s1709_s30 = smov 0  }
  0x11   :  { %s1711_s9 = smov 0   ;;  %s1713_s10 = smov 0  }
  0x12   :  { %s1715_s11 = smov 0   ;;  %s1717_s12 = smov 0  }
  0x13 LB: > { %2143 = sst [smem:[#allocation20_spill]] %s1616_s27  ;;  %s1744_s13 = sadd.s32 4294967295, %s1644_s12   ;;  %s1644_s12 = sphi %s1717_s12, %s28_s12   ;;  %s1640_s11 = sphi %s1715_s11, %s2182_s11   ;;  %s1636_s10 = sphi %s1713_s10, %s2181_s10   ;;  %s1632_s9 = sphi %s1711_s9, %s2180_s9   ;;  %s1628_s30 = sphi %s1709_s30, %s2179_s30   ;;  %s1624_s29 = sphi %s1707_s29, %s2178_s29   ;;  %s1620_s28 = sphi %s1705_s28, %s2177_s28   ;;  %s1616_s27 = sphi %s1703_s27, %s2176_s27  }
  0x14   : > { %s1097_s14 = sadd.s32 4294967294, %s1644_s12   ;;  %p60_p0 = scmp.ne.s32.totalorder %s1620_s28, %s1616_s27 }
  0x15   : > { %p2129_p1 = scmp.eq.s32.totalorder %s1744_s13, 0  ;;  %p242_p3 = scmp.eq.s32.totalorder %s1097_s14, 7 }
  0x16   : > { %p1098_p5 = scmp.ge.s32.totalorder %s1644_s12, 1  ;;  %p249_p7 = scmp.lt.s32.totalorder %s1644_s12, 9 }
  0x17   : > { %p1753_p4 = por %p2129_p1, %p60_p0  ;;  %p1758_p6 = por %p242_p3, %p60_p0 }
  0x18   : > { %p1763_p8 = pnand %p1098_p5, %p249_p7  ;;  %s1646_s18 = smov [#allocation10]  }
  0x19   : > { %s2144_s15 = scalar_select %p1753_p4, 1, 0 }
  0x1a   : > { %s2145_s16 = scalar_select %p1758_p6, 1, 0 }
  0x1b   : > { %s2147_s17 = scalar_select %p1763_p8, 1, 0 }
  0x1c   : > { %2146 = sst [smem:[#allocation21_spill]] %s2145_s16  ;;  %s261_s19 = sshll.u32 %s1646_s18, 4  ;;  %s1767_s19 = int_to_ptr.vmem [resolvable:$true] %s261_s19 }
  0x1d   : > { %p1284_p9 = pneg %p1763_p8  ;;  %s1647_s21 = smov [#allocation11]  }
  0x1e   : > { %s277_s22 = sshll.u32 %s1647_s21, 4  ;;  %s1648_s23 = smov [#allocation13]   ;;  %s1777_s22 = int_to_ptr.vmem [resolvable:$true] %s277_s22 }
  0x1f   : > { %p1773_p10 = pnand %p1284_p9, %p2129_p1  ;;  %s1779_s24 = sshll.u32 %s1648_s23, 4  ;;  %s294_s24 = int_to_ptr.vmem [resolvable:$true] %s1779_s24 }
  0x20   : > { %s2149_s2 = sld [smem:[#allocation24_spill]] }
  0x21   : > { %p1789_p12 = pneg %p1773_p10 }
  0x26   : > { %s1390_s14 = scalar_lea.hbm %s2149_s2, 2048 }
  0x27   : > { %p1391_p11 = scmp.ne.s32.totalorder %s2149_s2, %s1390_s14  ;;  %p1397_p3 = scmp.lt.u32.totalorder %s1390_s14, %s2149_s2 }
  0x29   : > { %p1393_p13 = pnand %p1789_p12, %p1391_p11 }
  0x2b   : > { %p1394_p0 = pneg %p1393_p13 }
  0x2d   : > { %p1399_p5 = pnand %p1397_p3, %p1394_p0 }
  0x2f   : > { %1402 = shalt.err (!%p1399_p5)
}
  0x30   : > { %s1403_s16 = scalar_lea.vmem %s1767_s19, 2048  ;;  %p1411_p2 = scmp.lt.s32.totalorder %s1767_s19, %s1767_s19 }
  0x31   : > { %p1404_p7 = scmp.ne.s32.totalorder %s1767_s19, %s1403_s16  ;;  %p1412_p6 = scmp.lt.s32.totalorder %s1403_s16, %s1403_s16 }
  0x33   : > { %p1406_p9 = pnand %p1404_p7, %p1789_p12  ;;  %p1413_p11 = por %p1412_p6, %p1411_p2 }
  0x35   : > { %p1407_p1 = pneg %p1406_p9 }
  0x37   : > { %p1414_p13 = pnand %p1413_p11, %p1407_p1 }
  0x39   : > { %1417 = shalt.err (!%p1414_p13)
}
  0x3a   : > { %s2133_s25 = smov 128   ;;  %s2134_s26 = smov 8  }
  0x3b   : > { %1287 = dma.hbm_to_vmem [thread:$0]  (!%p1773_p10), %s2149_s2, 2048, %s1767_s19, [#allocation9], %s2133_s25, %s2133_s25, %s2134_s26  }
  0x3c   : > { %s2151_s4 = sld [smem:[#allocation26_spill]] }
  0x42   : > { %s1418_s16 = scalar_lea.hbm %s2151_s4, 2048 }
  0x43   : > { %p1419_p1 = scmp.ne.s32.totalorder %s2151_s4, %s1418_s16  ;;  %p1425_p0 = scmp.lt.u32.totalorder %s1418_s16, %s2151_s4 }
  0x45   : > { %p1421_p2 = pnand %p1419_p1, %p1789_p12 }
  0x47   : > { %p1422_p6 = pneg %p1421_p2 }
  0x49   : > { %p1427_p3 = pnand %p1425_p0, %p1422_p6 }
  0x4b   : > { %1430 = shalt.err (!%p1427_p3)
}
  0x4c   : > { %s1431_s19 = scalar_lea.vmem %s1777_s22, 2048  ;;  %p1439_p11 = scmp.lt.s32.totalorder %s1777_s22, %s1777_s22 }
  0x4d   : > { %p1432_p5 = scmp.ne.s32.totalorder %s1777_s22, %s1431_s19  ;;  %p1440_p13 = scmp.lt.s32.totalorder %s1431_s19, %s1431_s19 }
  0x4f   : > { %p1434_p7 = pnand %p1432_p5, %p1789_p12  ;;  %p1441_p1 = por %p1440_p13, %p1439_p11 }
  0x51   : > { %p1435_p9 = pneg %p1434_p7 }
  0x53   : > { %p1442_p2 = pnand %p1441_p1, %p1435_p9 }
  0x55   : > { %1445 = shalt.err (!%p1442_p2)
}
  0x56   : > { %1290 = dma.hbm_to_vmem [thread:$0]  (!%p1773_p10), %s2151_s4, 2048, %s1777_s22, [#allocation12], %s2133_s25, %s2133_s25, %s2134_s26  }
  0x57   : > { %s2152_s6 = sld [smem:[#allocation28_spill]] }
  0x5d   : > { %s1446_s14 = scalar_lea.hbm %s2152_s6, 2048 }
  0x5e   : > { %p1447_p6 = scmp.ne.s32.totalorder %s2152_s6, %s1446_s14  ;;  %p1453_p5 = scmp.lt.u32.totalorder %s1446_s14, %s2152_s6 }
  0x60   : > { %p1449_p0 = pnand %p1447_p6, %p1789_p12 }
  0x62   : > { %p1450_p3 = pneg %p1449_p0 }
  0x64   : > { %p1455_p7 = pnand %p1453_p5, %p1450_p3 }
  0x66   : > { %1458 = shalt.err (!%p1455_p7)
}
  0x67   : > { %s1459_s19 = scalar_lea.vmem %s294_s24, 2048  ;;  %p1467_p1 = scmp.lt.s32.totalorder %s294_s24, %s294_s24 }
  0x68   : > { %p1460_p9 = scmp.ne.s32.totalorder %s294_s24, %s1459_s19  ;;  %p1468_p2 = scmp.lt.s32.totalorder %s1459_s19, %s1459_s19 }
  0x6a   : > { %p1462_p11 = pnand %p1460_p9, %p1789_p12  ;;  %p1469_p4 = por %p1468_p2, %p1467_p1 }
  0x6c   : > { %p1463_p13 = pneg %p1462_p11 }
  0x6e   : > { %p1470_p8 = pnand %p1469_p4, %p1463_p13 }
  0x70   : > { %1473 = shalt.err (!%p1470_p8)
}
  0x71   : > { %1293 = dma.hbm_to_vmem [thread:$0]  (!%p1773_p10), %s2152_s6, 2048, %s294_s24, [#allocation12], %s2133_s25, %s2133_s25, %s2134_s26  }
  0x72   : > { %s37_s27 = sadd.s32 1, %s1636_s10  ;;  %s40_s20 = sadd.s32 1, %s1640_s11 }
  0x73   : > { %p38_p4 = scmp.ge.s32.totalorder %s37_s27, 2  ;;  %s47_s5 = sadd.s32 1, %s1624_s29 }
  0x74   : > { %p54_p8 = scmp.ne.s32.totalorder %s1624_s29, %s1620_s28  ;;  %p55_p12 = scmp.eq.s32.totalorder %s1644_s12, 0 }
  0x75   : > { %s2184_s27 = smov (%p38_p4, %s37_s27), 0  ;;  %s2186_s20 = smov (!%p38_p4, %s40_s20), %s1640_s11 }
  0x76   : > { %s44_s7 = ssub.s32 %s1636_s10, %s2184_s27  ;;  %p42_p6 = scmp.ge.s32.totalorder %s2186_s20, 4 }
  0x77   : > { %p45_p0 = scmp.eq.s32.totalorder %s44_s7, 0  ;;  %p56_p3 = por %p55_p12, %p54_p8 }
  0x78   : > { %p2153_p5 = scmp.eq.s32.totalorder %s1744_s13, 7  ;;  %s2188_s20 = smov (%p42_p6, %s2186_s20), 0 }
  0x79   : > { %2155 = sst [smem:[#allocation22_spill]] %s2188_s20  ;;  %p1308_p7 = scmp.lt.s32.totalorder %s1644_s12, 8 }
  0x7a   : > { %p1874_p10 = por %p2153_p5, %p54_p8  ;;  %s1885_s14 = sand.u32 1, %s1624_s29  }
  0x7b   : > { %s1881_s8 = scalar_select %p45_p0, %s1624_s29, %s47_s5  }
  0x7c   : > { %s1103_s18 = sshll.u32 %s1885_s14, 5  ;;  %s1137_s21 = sshll.u32 %s1636_s10, 9 }
  0x7d   : > { %s2156_s0 = sld [smem:[#allocation23_spill]]  ;;  %s314_s22 = scalar_lea.vmem [#allocation5], %s1103_s18 }
  0x7e   : > { %s321_s3 = sshll.u32 %s314_s22, 4  ;;  %p1896_p9 = pnand %p1308_p7, %p56_p3  ;;  %s1894_s3 = int_to_ptr.vmem [resolvable:$true] %s321_s3 }
  0x7f   : > { %s1106_s25 = sshll.u32 %s1885_s14, 4  ;;  %s311_s26 = scalar_lea.sflag [#allocation6], %s1885_s14 }
  0x80   : > { %p1476_p13 = pneg %p1896_p9 }
  0x83   : > { %s1892_s19 = scalar_lea.hbm %s2156_s0, %s1137_s21  ;;  %s1479_s16 = scalar_lea.hbm %s2156_s0, 1024 }
  0x84   : > { %s1474_s23 = scalar_lea.hbm %s1892_s19, 512  ;;  %p1480_p4 = scmp.lt.u32.totalorder %s1892_s19, %s2156_s0 }
  0x85   : > { %p1475_p11 = scmp.ne.s32.totalorder %s1892_s19, %s1474_s23  ;;  %p1481_p8 = scmp.lt.u32.totalorder %s1479_s16, %s1474_s23 }
  0x86   : > { %p1483_p6 = scmp.lt.u32.totalorder %s1474_s23, %s1892_s19 }
  0x87   : > { %p1477_p1 = pnand %p1476_p13, %p1475_p11  ;;  %p1482_p12 = por %p1481_p8, %p1480_p4 }
  0x89   : > { %p1478_p2 = pneg %p1477_p1  ;;  %p1484_p0 = por %p1483_p6, %p1482_p12 }
  0x8b   : > { %p1485_p3 = pnand %p1484_p0, %p1478_p2 }
  0x8d   : > { %1488 = shalt.err (!%p1485_p3)
}
  0x8e   : > { %s1489_s7 = scalar_lea.vmem %s1894_s3, 512  ;;  %s1651_s18 = smov [#allocation5]  }
  0x8f   : > { %p1490_p5 = scmp.ne.s32.totalorder %s1894_s3, %s1489_s7  ;;  %s1494_s21 = sshll.u32 %s1651_s18, 4  ;;  %s1495_s21 = int_to_ptr.vmem [resolvable:$false] %s1494_s21 }
  0x90   : > { %s1496_s2 = scalar_lea.vmem %s1495_s21, 1024  ;;  %p1497_p1 = scmp.lt.s32.totalorder %s1894_s3, %s1495_s21 }
  0x91   : > { %p1492_p7 = pnand %p1490_p5, %p1476_p13  ;;  %p1498_p4 = scmp.lt.s32.totalorder %s1496_s2, %s1489_s7 }
  0x93   : > { %p1493_p11 = pneg %p1492_p7  ;;  %p1499_p8 = por %p1498_p4, %p1497_p1 }
  0x95   : > { %p1500_p12 = pnand %p1499_p8, %p1493_p11 }
  0x97   : > { %1503 = shalt.err (!%p1500_p12)
}
  0x98   : > { %s2158_s23 = smov 8   ;;  %s2159_s16 = smov 128  }
  0x99   : > { %1297 = dma.hbm_to_vmem [thread:$0]  (!%p1896_p9), %s1892_s19, 512, %s1894_s3, %s311_s26, %s2159_s16, %s2159_s16, %s2158_s23  }
  0x9a   : > { %s1138_s22 = sshll.u32 %s1636_s10, 8  ;;  %s335_s2 = scalar_lea.vmem [#allocation8], %s1106_s25 }
  0x9b   : > { %s1937_s21 = scalar_lea.hbm %s2119_s1, %s1138_s22  ;;  %s342_s0 = sshll.u32 %s335_s2, 4  ;;  %s1941_s0 = int_to_ptr.vmem [resolvable:$true] %s342_s0 }
  0x9c   : > { %s2160_s4 = sand.u32 1, %s1644_s12   ;;  %s1504_s20 = scalar_lea.hbm %s1937_s21, 256 }
  0x9d   : > { %s1945_s6 = scalar_lea.sflag [#allocation9], %s2160_s4  ;;  %p1505_p2 = scmp.ne.s32.totalorder %s1937_s21, %s1504_s20 }
  0x9e   : > { %s1509_s14 = scalar_lea.hbm %s2119_s1, 512  ;;  %p1510_p3 = scmp.lt.u32.totalorder %s1937_s21, %s2119_s1 }
  0x9f   : > { %p1507_p6 = pnand %p1505_p2, %p1476_p13  ;;  %p1511_p5 = scmp.lt.u32.totalorder %s1509_s14, %s1504_s20 }
  0xa0   : > { %p1513_p11 = scmp.lt.u32.totalorder %s1504_s20, %s1937_s21 }
  0xa1   : > { %p1508_p0 = pneg %p1507_p6  ;;  %p1512_p7 = por %p1511_p5, %p1510_p3 }
  0xa3   : > { %p1514_p1 = por %p1513_p11, %p1512_p7 }
  0xa5   : > { %p1515_p4 = pnand %p1514_p1, %p1508_p0 }
  0xa7   : > { %1518 = shalt.err (!%p1515_p4)
}
  0xa8   : > { %s1519_s4 = scalar_lea.vmem %s1941_s0, 256  ;;  %s1652_s25 = smov [#allocation8]  }
  0xa9   : > { %p1520_p8 = scmp.ne.s32.totalorder %s1941_s0, %s1519_s4  ;;  %s1524_s16 = sshll.u32 %s1652_s25, 4  ;;  %s1525_s16 = int_to_ptr.vmem [resolvable:$false] %s1524_s16 }
  0xaa   : > { %s1526_s22 = scalar_lea.vmem %s1525_s16, 512  ;;  %p1527_p6 = scmp.lt.s32.totalorder %s1941_s0, %s1525_s16 }
  0xab   : > { %p1522_p12 = pnand %p1520_p8, %p1476_p13  ;;  %p1528_p3 = scmp.lt.s32.totalorder %s1526_s22, %s1519_s4 }
  0xad   : > { %p1523_p2 = pneg %p1522_p12  ;;  %p1529_p5 = por %p1528_p3, %p1527_p6 }
  0xaf   : > { %p1530_p7 = pnand %p1529_p5, %p1523_p2 }
  0xb1   : > { %1533 = shalt.err (!%p1530_p7)
}
  0xb2   : > { %s1653_s20 = smov 64   ;;  %s1654_s18 = smov 4  }
  0xb3   : > { %1300 = dma.hbm_to_vmem [thread:$0]  (!%p1896_p9), %s1937_s21, 256, %s1941_s0, %s1945_s6, %s1653_s20, %s1653_s20, %s1654_s18  }
  0xb4   : > { %p2161_p13 = scmp.ne.s32.totalorder %s2147_s17, 0 }
  0xb5   : > { %s1974_s7 = sand.u32 (!%p2161_p13), 1, %s1620_s28   ;;  %p2162_p0 = scmp.ne.s32.totalorder (!%p2161_p13), %s2144_s15, 0 }
  0xb6   : > { %354 = sbr.rel (%p2161_p13) target bundleno = 1420 (0x58c), region = 52  ;;  %s1110_s2 = sshll.u32 (!%p2161_p13), %s1974_s7, 5 }
  0xb7   : > { %s357_s26 = scalar_lea.sflag (!%p2161_p13), [#allocation6], %s1974_s7  ;;  %s1978_s19 = scalar_lea.vmem (!%p2161_p13), [#allocation5], %s1110_s2 }
  0xbd   : > { %1595 = dma.done.wait (%p2162_p0), %s357_s26, 512  }
  0xbe   : > { %1597 = vsyncadd (%p2162_p0), %s357_s26, 4294966784  ;;  %s365_s0 = sand.u32 1, %s1744_s13   ;;  %s1111_s6 = sshll.u32 %s1974_s7, 4 }
  0xbf   : > { %s366_s17 = scalar_lea.sflag [#allocation9], %s365_s0  ;;  %s1986_s5 = scalar_lea.vmem [#allocation8], %s1111_s6 }
  0xc0   : > { %1599 = dma.done.wait (%p2162_p0), %s366_s17, 256  }
  0xc1   : > { %1601 = vsyncadd (%p2162_p0), %s366_s17, 4294967040  ;;  %p2163_p9 = scmp.eq.s32.totalorder %s1744_s13, 0 }
  0xc3   : > { %1603 = dma.done.wait (%p2163_p9), [#allocation9], 2048   ;;  %p2164_p11 = pmov %p2163_p9 }
  0xc4   : > { %p2165_p1 = pmov %p2163_p9 }
  0xc5   : > { %1605 = vsyncadd (%p2164_p11), [#allocation9], 4294965248 }
  0xc6   : > { %1607 = dma.done.wait (%p2165_p1), [#allocation12], 4096   ;;  %p2166_p4 = pmov %p2165_p1 }
  0xc7   : > { %s2001_s21 = sshll.u32 %s1628_s30, 5  ;;  %s2003_s14 = scalar_lea.vmem [#allocation14], %s1110_s2 }
  0xc8   : > { %1609 = vsyncadd (%p2166_p4), [#allocation12], 4294963200  ;;  %p1117_p8 = scmp.ne.s32.totalorder %s1632_s9, 0 }
  0xc9   : > { %v432_v0 = vld [vmem:[#allocation10] sm:$0xff] (!%p1117_p8)  ;;  %v433_v1 = vld [vmem:[#allocation10 + $0x8] sm:$0xff] (!%p1117_p8)  ;;  %v434_v2 = vld [vmem:[#allocation10 + $0x10] sm:$0xff] (!%p1117_p8)  ;;  %s2167_s3 = sld [smem:[#allocation25_spill]] (!%p1117_p8)  ;;  %s2168_s25 = sld [smem:[#allocation27_spill]] (!%p1117_p8) }
  0xca   : > { %427 = sbr.rel (%p1117_p8) target bundleno = 900 (0x384), region = 76  ;;  %v451_v3 = vpack.c.bf16 (!%p1117_p8), %v433_v1, %v432_v0  ;;  %v435_v4 = vld [vmem:[#allocation10 + $0x18] sm:$0xff] (!%p1117_p8)  ;;  %v436_v6 = vld [vmem:[#allocation10 + $0x20] sm:$0xff] (!%p1117_p8)  ;;  %v437_v7 = vld [vmem:[#allocation10 + $0x28] sm:$0xff] (!%p1117_p8)  ;;  %s2169_s20 = sld [smem:[#allocation29_spill]] (!%p1117_p8) }
  0xcb   : > { %v452_v5 = vpack.c.bf16 (!%p1117_p8), %v435_v4, %v434_v2  ;;  %v453_v8 = vpack.c.bf16 (!%p1117_p8), %v437_v7, %v436_v6  ;;  %v428_v9 = vld [vmem:[%s1978_s19] sm:$0xff] (!%p1117_p8)  ;;  %v429_v10 = vld [vmem:[%s1978_s19 + $0x8] sm:$0xff] (!%p1117_p8)  ;;  %v438_v11 = vld [vmem:[#allocation10 + $0x30] sm:$0xff] (!%p1117_p8)  ;;  %s695_s18 = scalar_lea.vmem (!%p1117_p8), [#allocation3], %s2001_s21  ;;  %s690_s2 = scalar_lea.vmem (!%p1117_p8), [#allocation2], %s2001_s21 }
  0xcc   : > { %1182 = vmatprep.subr.bf16.mxu0 (!%p1117_p8), %v451_v3  ;;  %v439_v12 = vld [vmem:[#allocation10 + $0x38] sm:$0xff] (!%p1117_p8)  ;;  %v449_v13 = vpack.c.bf16 (!%p1117_p8), %v429_v10, %v428_v9  ;;  %v518_v14 = vld [vmem:[#allocation11] sm:$0xff] (!%p1117_p8)  ;;  %v519_v15 = vld [vmem:[#allocation11 + $0x8] sm:$0xff] (!%p1117_p8) }
  0xcd   : > { %1183 = vmatpush3.bf16.msra.mxu0 (!%p1117_p8), %v451_v3  ;;  %v520_v16 = vld [vmem:[#allocation11 + $0x10] sm:$0xff] (!%p1117_p8)  ;;  %v521_v17 = vld [vmem:[#allocation11 + $0x18] sm:$0xff] (!%p1117_p8)  ;;  %v537_v18 = vpack.c.bf16 (!%p1117_p8), %v519_v15, %v518_v14  ;;  %v454_v20 = vpack.c.bf16 (!%p1117_p8), %v439_v12, %v438_v11  ;;  %v522_v21 = vld [vmem:[#allocation11 + $0x20] sm:$0xff] (!%p1117_p8) }
  0xce   : > { %1184 = vmatprep.subr.bf16.mxu0 (!%p1117_p8), %v452_v5  ;;  %1198 = vmatprep.mubr.bf16.mxu0 (!%p1117_p8), %v449_v13  ;;  %v538_v19 = vpack.c.bf16 (!%p1117_p8), %v521_v17, %v520_v16  ;;  %v523_v22 = vld [vmem:[#allocation11 + $0x28] sm:$0xff] (!%p1117_p8)  ;;  %v440_v23 = vld [vmem:[#allocation10 + $0x40] sm:$0xff] (!%p1117_p8)  ;;  %v524_v27 = vld [vmem:[#allocation11 + $0x30] sm:$0xff] (!%p1117_p8) }
  0xcf   : > { %v441_v24 = vld [vmem:[#allocation10 + $0x48] sm:$0xff] (!%p1117_p8)  ;;  %1202 = vmatprep.subr.bf16.mxu1 (!%p1117_p8), %v537_v18  ;;  %v539_v25 = vpack.c.bf16 (!%p1117_p8), %v523_v22, %v522_v21  ;;  %v525_v28 = vld [vmem:[#allocation11 + $0x38] sm:$0xff] (!%p1117_p8)  ;;  %v442_v29 = vld [vmem:[#allocation10 + $0x50] sm:$0xff] (!%p1117_p8) }
  0xd0   : > { %1203 = vmatpush3.bf16.msra.mxu1 (!%p1117_p8), %v537_v18  ;;  %v455_v26 = vpack.c.bf16 (!%p1117_p8), %v441_v24, %v440_v23  ;;  %v443_v30 = vld [vmem:[#allocation10 + $0x58] sm:$0xff] (!%p1117_p8)  ;;  %v540_v31 = vpack.c.bf16 (!%p1117_p8), %v525_v28, %v524_v27  ;;  %v526_v33 = vld [vmem:[#allocation11 + $0x40] sm:$0xff] (!%p1117_p8)  ;;  %v527_v34 = vld [vmem:[#allocation11 + $0x48] sm:$0xff] (!%p1117_p8) }
  0xd1   : > { %1185 = vmatpush3.bf16.msra.mxu0 %v452_v5  ;;  %1204 = vmatprep.subr.bf16.mxu1 %v538_v19  ;;  %v456_v32 = vpack.c.bf16 %v443_v30, %v442_v29  ;;  %v444_v35 = vld [vmem:[#allocation10 + $0x60] sm:$0xff]  ;;  %v445_v36 = vld [vmem:[#allocation10 + $0x68] sm:$0xff]  ;;  %v541_v37 = vpack.c.bf16 %v527_v34, %v526_v33  ;;  %v528_v39 = vld [vmem:[#allocation11 + $0x50] sm:$0xff] }
  0xd2   : > { %1186 = vmatprep.subr.bf16.mxu0 %v453_v8  ;;  %v457_v38 = vpack.c.bf16 %v445_v36, %v444_v35  ;;  %v529_v40 = vld [vmem:[#allocation11 + $0x58] sm:$0xff]  ;;  %v446_v41 = vld [vmem:[#allocation10 + $0x70] sm:$0xff]  ;;  %v530_v48 = vld [vmem:[#allocation11 + $0x60] sm:$0xff] }
  0xd3   : > { %v447_v42 = vld [vmem:[#allocation10 + $0x78] sm:$0xff]  ;;  %v542_v43 = vpack.c.bf16 %v529_v40, %v528_v39  ;;  %v430_v45 = vld [vmem:[%s1978_s19 + $0x10] sm:$0xff]  ;;  %v531_v49 = vld [vmem:[#allocation11 + $0x68] sm:$0xff] }
  0xd4   : > { %1205 = vmatpush3.bf16.msra.mxu1 %v538_v19  ;;  %v458_v44 = vpack.c.bf16 %v447_v42, %v446_v41  ;;  %v431_v46 = vld [vmem:[%s1978_s19 + $0x18] sm:$0xff]  ;;  %v543_v50 = vpack.c.bf16 %v531_v49, %v530_v48  ;;  %v532_v51 = vld [vmem:[#allocation11 + $0x70] sm:$0xff]  ;;  %v604_v54 = vld [vmem:[#allocation13] sm:$0xff] }
  0xd5   : > { %1187 = vmatpush3.bf16.msra.mxu0 %v453_v8  ;;  %1206 = vmatprep.subr.bf16.mxu1 %v539_v25  ;;  %v450_v47 = vpack.c.bf16 %v431_v46, %v430_v45  ;;  %v533_v52 = vld [vmem:[#allocation11 + $0x78] sm:$0xff]  ;;  %v605_v55 = vld [vmem:[#allocation13 + $0x8] sm:$0xff]  ;;  %v606_v56 = vld [vmem:[#allocation13 + $0x10] sm:$0xff] }
  0xd6   : > { %1188 = vmatprep.subr.bf16.mxu0 %v454_v20  ;;  %v544_v53 = vpack.c.bf16 %v533_v52, %v532_v51  ;;  %v623_v57 = vpack.c.bf16 %v605_v55, %v604_v54  ;;  %v607_v58 = vld [vmem:[#allocation13 + $0x18] sm:$0xff]  ;;  %v608_v60 = vld [vmem:[#allocation13 + $0x20] sm:$0xff]  ;;  %v609_v61 = vld [vmem:[#allocation13 + $0x28] sm:$0xff] }
  0xd7   : > { %v624_v59 = vpack.c.bf16 %v607_v58, %v606_v56  ;;  %v625_v62 = vpack.c.bf16 %v609_v61, %v608_v60  ;;  %v610_v63 = vld [vmem:[#allocation13 + $0x30] sm:$0xff]  ;;  %v611_v0 = vld [vmem:[#allocation13 + $0x38] sm:$0xff]  ;;  %v612_v2 = vld [vmem:[#allocation13 + $0x40] sm:$0xff] }
  0xd8   : > { %1207 = vmatpush3.bf16.msra.mxu1 %v539_v25  ;;  %v626_v1 = vpack.c.bf16 %v611_v0, %v610_v63  ;;  %v613_v3 = vld [vmem:[#allocation13 + $0x48] sm:$0xff]  ;;  %v614_v5 = vld [vmem:[#allocation13 + $0x50] sm:$0xff]  ;;  %v615_v6 = vld [vmem:[#allocation13 + $0x58] sm:$0xff] }
  0xd9   : > { %1189 = vmatpush3.bf16.msra.mxu0 %v454_v20  ;;  %1208 = vmatprep.subr.bf16.mxu1 %v540_v31  ;;  %v627_v4 = vpack.c.bf16 %v613_v3, %v612_v2  ;;  %v628_v7 = vpack.c.bf16 %v615_v6, %v614_v5  ;;  %v1118_v8 = vld [vmem:[%s2167_s3] ss:$0 sm:$0xff]  ;;  %v617_v24 = vld [vmem:[#allocation13 + $0x68] sm:$0xff]  ;;  %v619_v27 = vld [vmem:[#allocation13 + $0x78] sm:$0xff] }
  0xda   : > { %1190 = vmatprep.subr.bf16.mxu0 %v455_v26  ;;  %v616_v23 = vld [vmem:[#allocation13 + $0x60] sm:$0xff] }
  0xdb   : > { %v629_v25 = vpack.c.bf16 %v617_v24, %v616_v23  ;;  %v1119_v29 = vld [vmem:[%s2168_s25] ss:$0 sm:$0xff] }
  0xdc   : > { %1209 = vmatpush3.bf16.msra.mxu1 %v540_v31 }
  0xdd   : > { %1191 = vmatpush3.bf16.msra.mxu0 %v455_v26  ;;  %1210 = vmatprep.subr.bf16.mxu1 %v541_v37  ;;  %v618_v26 = vld [vmem:[#allocation13 + $0x70] sm:$0xff] }
  0xde   : > { %1192 = vmatprep.subr.bf16.mxu0 %v456_v32  ;;  %v630_v28 = vpack.c.bf16 %v619_v27, %v618_v26 }
  0xe0   : > { %1211 = vmatpush3.bf16.msra.mxu1 %v541_v37 }
  0xe1   : > { %1193 = vmatpush3.bf16.msra.mxu0 %v456_v32  ;;  %1212 = vmatprep.subr.bf16.mxu1 %v542_v43 }
  0xe2   : > { %1194 = vmatprep.subr.bf16.mxu0 %v457_v38 }
  0xe4   : > { %1213 = vmatpush3.bf16.msra.mxu1 %v542_v43 }
  0xe5   : > { %1195 = vmatpush3.bf16.msra.mxu0 %v457_v38  ;;  %1214 = vmatprep.subr.bf16.mxu1 %v543_v50 }
  0xe6   : > { %1196 = vmatprep.subr.bf16.mxu0 %v458_v44 }
  0xe8   : > { %1215 = vmatpush3.bf16.msra.mxu1 %v543_v50 }
  0xe9   : > { %1197 = vmatpush3.bf16.msra.mxu0 %v458_v44  ;;  %1216 = vmatprep.subr.bf16.mxu1 %v544_v53  ;;  %v1120_v44 = vld [vmem:[%s2169_s20] ss:$0 sm:$0xff] }
  0xea   : > { %1222 = vmatprep.subr.bf16.mxu0 %v623_v57 }
  0xec   : > { %1199 = vmatmul.mubr.bf16.vlgmr.msra.gmra.mrb[0].mxu0 %v450_v47  ;;  %1217 = vmatpush3.bf16.msra.mxu1 %v544_v53 }
  0xed   : > { %1223 = vmatpush3.bf16.msra.mxu0 %v623_v57 }
  0xee   : > { %1224 = vmatprep.subr.bf16.mxu0 %v624_v59 }
  0xf1   : > { %1225 = vmatpush3.bf16.msra.mxu0 %v624_v59 }
  0xf2   : > { %1226 = vmatprep.subr.bf16.mxu0 %v625_v62 }
  0xf5   : > { %1227 = vmatpush3.bf16.msra.mxu0 %v625_v62 }
  0xf6   : > { %1228 = vmatprep.subr.bf16.mxu0 %v626_v1 }
  0xf9   : > { %1229 = vmatpush3.bf16.msra.mxu0 %v626_v1 }
  0xfa   : > { %1230 = vmatprep.subr.bf16.mxu0 %v627_v4 }
  0xfd   : > { %1231 = vmatpush3.bf16.msra.mxu0 %v627_v4 }
  0xfe   : > { %1232 = vmatprep.subr.bf16.mxu0 %v628_v7 }
 0x101   : > { %1233 = vmatpush3.bf16.msra.mxu0 %v628_v7 }
 0x102   : > { %1234 = vmatprep.subr.bf16.mxu0 %v629_v25 }
 0x105   : > { %1235 = vmatpush3.bf16.msra.mxu0 %v629_v25 }
 0x106   : > { %1236 = vmatprep.subr.bf16.mxu0 %v630_v28 }
 0x109   : > { %1237 = vmatpush3.bf16.msra.mxu0 %v630_v28 }
 0x1bf   : > { %v1200_v9 = vpop.f32.mrb[0].mxu0 }
 0x1c0   : > { %v508_v10 = vadd.f32 %v1200_v9, %v1118_v8  ;;  %v499_v11 = vpop.f32.mrb[1].mxu0 }
 0x1c1   : > { %v500_v12 = vadd.f32 %v1118_v8, %v499_v11  ;;  %v1201_v13 = vpop.f32.mrb[2].mxu0 }
 0x1c2   : > { %v511_v14 = vadd.f32 %v1201_v13, %v1118_v8  ;;  %v502_v15 = vpop.f32.mrb[3].mxu0  ;;  %v516_v17 = vmax.f32 %v508_v10, 0.0 }
 0x1c3   : > { %v503_v16 = vadd.f32 %v1118_v8, %v502_v15  ;;  %v514_v19 = vmax.f32 %v500_v12, 0.0 }
 0x1c4   : > { %v517_v18 = vmax.f32 %v511_v14, 0.0 }
 0x1c5   : > { %v515_v20 = vmax.f32 %v503_v16, 0.0 }
 0x1c6   : > { %v536_v21 = vpack.c.bf16 %v517_v18, %v516_v17 }
 0x1c7   : > { %v535_v22 = vpack.c.bf16 %v515_v20, %v514_v19 }
 0x1c9   : > { %1218 = vmatprep.mubr.bf16.mxu1 %v535_v22 }
 0x1ca   : > { %1219 = vmatmul.mubr.bf16.vlgmr.msra.gmra.mrb[0].mxu1 %v536_v21 }
 0x29d   : > { %v1220_v30 = vpop.f32.mrb[0].mxu1 }
 0x29e   : > { %v594_v31 = vadd.f32 %v1220_v30, %v1119_v29  ;;  %v585_v32 = vpop.f32.mrb[1].mxu1 }
 0x29f   : > { %v586_v33 = vadd.f32 %v1119_v29, %v585_v32  ;;  %v1221_v34 = vpop.f32.mrb[2].mxu1 }
 0x2a0   : > { %v597_v35 = vadd.f32 %v1221_v34, %v1119_v29  ;;  %v588_v36 = vpop.f32.mrb[3].mxu1  ;;  %v602_v38 = vmax.f32 %v594_v31, 0.0 }
 0x2a1   : > { %v589_v37 = vadd.f32 %v1119_v29, %v588_v36  ;;  %v600_v40 = vmax.f32 %v586_v33, 0.0 }
 0x2a2   : > { %v603_v39 = vmax.f32 %v597_v35, 0.0 }
 0x2a3   : > { %v601_v41 = vmax.f32 %v589_v37, 0.0 }
 0x2a4   : > { %v622_v42 = vpack.c.bf16 %v603_v39, %v602_v38 }
 0x2a5   : > { %v621_v43 = vpack.c.bf16 %v601_v41, %v600_v40 }
 0x2a7   : > { %1238 = vmatprep.mubr.bf16.mxu0 %v621_v43 }
 0x2a8   : > { %1239 = vmatmul.mubr.bf16.vlgmr.msra.gmra.mrb[4].mxu0 %v622_v42 }
 0x37b   : > { %v1240_v45 = vpop.f32.mrb[4].mxu0 }
 0x37c   : > { %v680_v46 = vadd.f32 %v1240_v45, %v1120_v44  ;;  %v671_v47 = vpop.f32.mrb[5].mxu0 }
 0x37d   : > { %v672_v48 = vadd.f32 %v1120_v44, %v671_v47  ;;  %v1241_v49 = vpop.f32.mrb[6].mxu0 }
 0x37e   : > { %v688_v50 = vmul.f32 0.1, %v680_v46  ;;  %698 = vst [vmem:[%s695_s18 + $0x10] sm:$0xff] %v680_v46  ;;  %702 = vst [vmem:[%s2003_s14 + $0x10] sm:$0xff] %v680_v46  ;;  %v683_v51 = vadd.f32 %v1241_v49, %v1120_v44  ;;  %v674_v52 = vpop.f32.mrb[7].mxu0 }
 0x37f   : > { %v686_v53 = vmul.f32 0.1, %v672_v48  ;;  %696 = vst [vmem:[%s695_s18] sm:$0xff] %v672_v48  ;;  %700 = vst [vmem:[%s2003_s14] sm:$0xff] %v672_v48  ;;  %v675_v54 = vadd.f32 %v1120_v44, %v674_v52 }
 0x380   : > { %693 = vst [vmem:[%s690_s2 + $0x10] sm:$0xff] %v688_v50  ;;  %v689_v55 = vmul.f32 0.1, %v683_v51  ;;  %699 = vst [vmem:[%s695_s18 + $0x18] sm:$0xff] %v683_v51 }
 0x381   : > { %703 = vst [vmem:[%s2003_s14 + $0x18] sm:$0xff] %v683_v51  ;;  %691 = vst [vmem:[%s690_s2] sm:$0xff] %v686_v53  ;;  %v687_v56 = vmul.f32 0.1, %v675_v54 }
 0x382   : > { %697 = vst [vmem:[%s695_s18 + $0x8] sm:$0xff] %v675_v54  ;;  %701 = vst [vmem:[%s2003_s14 + $0x8] sm:$0xff] %v675_v54 }
 0x383   : > { %694 = vst [vmem:[%s690_s2 + $0x18] sm:$0xff] %v689_v55  ;;  %692 = vst [vmem:[%s690_s2 + $0x8] sm:$0xff] %v687_v56 }
 0x384 PF: > { %p705_p12 = scmp.lt.s32.totalorder %s1632_s9, 0  ;;  %s706_s26 = ssub.s32 0, %s1632_s9 }
 0x385   : > { %s1121_s19 = smin.u32 %s1632_s9, %s706_s26  ;;  %p704_p6 = scmp.gt.s32.totalorder %s1632_s9, 0 }
 0x386   : > { %s708_s0 = sand.u32 1, %s1121_s19  }
 0x387   : > { %s709_s6 = ssub.s32 0, %s708_s0 }
 0x388   : > { %s2190_s6 = smov (!%p705_p12, %s709_s6), %s708_s0 }
 0x389   : > { %p1123_p2 = scmp.lt.s32.totalorder %s2190_s6, 0  ;;  %s715_s17 = sadd.s32 2, %s2190_s6 }
 0x38b   : > { %s2192_s17 = smov (!%p1123_p2, %s715_s17), %s2190_s6 }
 0x38c   : > { %p717_p3 = scmp.eq.s32.totalorder %s2192_s17, 1 }
 0x38e   : > { %p718_p5 = pnand %p717_p3, %p704_p6 }
 0x38f   : > { %v726_v57 = vld [vmem:[#allocation3] sm:$0xff] (!%p718_p5)  ;;  %v727_v58 = vld [vmem:[#allocation3 + $0x8] sm:$0xff] (!%p718_p5)  ;;  %v728_v59 = vld [vmem:[#allocation3 + $0x10] sm:$0xff] (!%p718_p5)  ;;  %vm748_vm0 = vcmask (!%p718_p5), 523264   ;;  %s808_s13 = scalar_lea.vmem (!%p718_p5), [#allocation2], %s2001_s21  ;;  %s817_s15 = scalar_lea.vmem (!%p718_p5), [#allocation4], %s2001_s21 }
 0x390   : > { %721 = sbr.rel (%p718_p5) target bundleno = 1150 (0x47e), region = 80  ;;  %v734_v60 = vpack.c.bf16 (!%p718_p5), %v727_v58, %v726_v57  ;;  %v729_v61 = vld [vmem:[#allocation3 + $0x18] sm:$0xff] (!%p718_p5)  ;;  %v730_v63 = vld [vmem:[#allocation3 + $0x20] sm:$0xff] (!%p718_p5)  ;;  %v731_v0 = vld [vmem:[#allocation3 + $0x28] sm:$0xff] (!%p718_p5) }
 0x391   : > { %v735_v62 = vpack.c.bf16 (!%p718_p5), %v729_v61, %v728_v59  ;;  %v1386_v1 = vld [vmem:[%s1986_s5] sm:$0xff] (!%p718_p5)   ;;  %v736_v2 = vpack.c.bf16 (!%p718_p5), %v731_v0, %v730_v63  ;;  %v733_v4 = vld [vmem:[#allocation3 + $0x38] sm:$0xff] (!%p718_p5)  ;;  %v810_v18 = vld [vmem:[%s808_s13 + $0x8] sm:$0xff] (!%p718_p5) }
 0x392   : > { %1242 = vmatprep.subr.bf16.mxu0 (!%p718_p5), %v734_v60  ;;  %1250 = vmatprep.mubr.msk.bf16.mxu0 (!%p718_p5), %vm748_vm0, %v1386_v1  ;;  %v732_v3 = vld [vmem:[#allocation3 + $0x30] sm:$0xff] (!%p718_p5)  ;;  %v1387_v6 = vld [vmem:[%s1986_s5 + $0x8] sm:$0xff] (!%p718_p5)   ;;  %v809_v11 = vld [vmem:[%s808_s13] sm:$0xff] (!%p718_p5) }
 0x393   : > { %1243 = vmatpush3.bf16.msra.mxu0 (!%p718_p5), %v734_v60  ;;  %v737_v5 = vpack.c.bf16 (!%p718_p5), %v733_v4, %v732_v3  ;;  %v811_v8 = vld [vmem:[%s808_s13 + $0x10] sm:$0xff] (!%p718_p5)  ;;  %v812_v14 = vld [vmem:[%s808_s13 + $0x18] sm:$0xff] (!%p718_p5) }
 0x394   : > { %1244 = vmatprep.subr.bf16.mxu0 (!%p718_p5), %v735_v62 }
 0x397   : > { %1245 = vmatpush3.bf16.msra.mxu0 %v735_v62 }
 0x398   : > { %1246 = vmatprep.subr.bf16.mxu0 %v736_v2 }
 0x39b   : > { %1247 = vmatpush3.bf16.msra.mxu0 %v736_v2 }
 0x39c   : > { %1248 = vmatprep.subr.bf16.mxu0 %v737_v5 }
 0x39f   : > { %1249 = vmatpush3.bf16.msra.mxu0 %v737_v5 }
 0x3a2   : > { %1251 = vmatmul.mubr.msk.bf16.vlgmr.msra.gmra.mrb[0].mxu0 %vm748_vm0, %v1387_v6 }
 0x475   : > { %v1252_v7 = vpop.f32.mrb[0].mxu0 }
 0x476   : > { %v806_v9 = vmul.f32 0.9, %v1252_v7  ;;  %v789_v10 = vpop.f32.mrb[1].mxu0 }
 0x477   : > { %v804_v12 = vmul.f32 0.9, %v789_v10  ;;  %v1253_v13 = vpop.f32.mrb[2].mxu0 }
 0x478   : > { %v815_v15 = vadd.f32 %v811_v8, %v806_v9  ;;  %v807_v16 = vmul.f32 0.9, %v1253_v13  ;;  %v792_v17 = vpop.f32.mrb[3].mxu0 }
 0x479   : > { %v813_v19 = vadd.f32 %v809_v11, %v804_v12  ;;  %v805_v20 = vmul.f32 0.9, %v792_v17 }
 0x47a   : > { %820 = vst [vmem:[%s817_s15 + $0x10] sm:$0xff] %v815_v15  ;;  %824 = vst [vmem:[%s2003_s14 + $0x10] sm:$0xff] %v815_v15  ;;  %v816_v21 = vadd.f32 %v812_v14, %v807_v16 }
 0x47b   : > { %818 = vst [vmem:[%s817_s15] sm:$0xff] %v813_v19  ;;  %822 = vst [vmem:[%s2003_s14] sm:$0xff] %v813_v19  ;;  %v814_v22 = vadd.f32 %v810_v18, %v805_v20 }
 0x47c   : > { %821 = vst [vmem:[%s817_s15 + $0x18] sm:$0xff] %v816_v21  ;;  %825 = vst [vmem:[%s2003_s14 + $0x18] sm:$0xff] %v816_v21 }
 0x47d   : > { %819 = vst [vmem:[%s817_s15 + $0x8] sm:$0xff] %v814_v22  ;;  %823 = vst [vmem:[%s2003_s14 + $0x8] sm:$0xff] %v814_v22 }
 0x47e PF: > { %p826_p7 = scmp.eq.s32.totalorder %s2192_s17, 0 }
 0x480   : > { %p827_p13 = pnand %p826_p7, %p704_p6 }
 0x481   : > { %vm857_vm1 = vcmask (!%p827_p13), 523264   ;;  %v1388_v31 = vld [vmem:[%s1986_s5] sm:$0xff] (!%p827_p13)   ;;  %v1389_v36 = vld [vmem:[%s1986_s5 + $0x8] sm:$0xff] (!%p827_p13)   ;;  %s917_s9 = scalar_lea.vmem (!%p827_p13), [#allocation2], %s2001_s21  ;;  %s926_s5 = scalar_lea.vmem (!%p827_p13), [#allocation3], %s2001_s21 }
 0x482   : > { %830 = sbr.rel (%p827_p13) target bundleno = 1395 (0x573), region = 84  ;;  %1262 = vmatprep.mubr.msk.bf16.mxu0 (!%p827_p13), %vm857_vm1, %v1388_v31  ;;  %v920_v38 = vld [vmem:[%s917_s9 + $0x10] sm:$0xff] (!%p827_p13)  ;;  %v918_v41 = vld [vmem:[%s917_s9] sm:$0xff] (!%p827_p13)  ;;  %v921_v44 = vld [vmem:[%s917_s9 + $0x18] sm:$0xff] (!%p827_p13) }
 0x483   : > { %v919_v48 = vld [vmem:[%s917_s9 + $0x8] sm:$0xff] (!%p827_p13) }
 0x484   : > { %v835_v23 = vld [vmem:[#allocation4] sm:$0xff] (!%p827_p13)  ;;  %v836_v24 = vld [vmem:[#allocation4 + $0x8] sm:$0xff] (!%p827_p13)  ;;  %v837_v25 = vld [vmem:[#allocation4 + $0x10] sm:$0xff] (!%p827_p13) }
 0x485   : > { %v843_v26 = vpack.c.bf16 (!%p827_p13), %v836_v24, %v835_v23  ;;  %v838_v27 = vld [vmem:[#allocation4 + $0x18] sm:$0xff] (!%p827_p13)  ;;  %v839_v29 = vld [vmem:[#allocation4 + $0x20] sm:$0xff] (!%p827_p13)  ;;  %v840_v30 = vld [vmem:[#allocation4 + $0x28] sm:$0xff] (!%p827_p13) }
 0x486   : > { %v844_v28 = vpack.c.bf16 (!%p827_p13), %v838_v27, %v837_v25  ;;  %v845_v32 = vpack.c.bf16 (!%p827_p13), %v840_v30, %v839_v29  ;;  %v841_v33 = vld [vmem:[#allocation4 + $0x30] sm:$0xff] (!%p827_p13)  ;;  %v842_v34 = vld [vmem:[#allocation4 + $0x38] sm:$0xff] (!%p827_p13) }
 0x487   : > { %1254 = vmatprep.subr.bf16.mxu0 (!%p827_p13), %v843_v26  ;;  %v846_v35 = vpack.c.bf16 (!%p827_p13), %v842_v34, %v841_v33 }
 0x488   : > { %1255 = vmatpush3.bf16.msra.mxu0 (!%p827_p13), %v843_v26 }
 0x489   : > { %1256 = vmatprep.subr.bf16.mxu0 %v844_v28 }
 0x48c   : > { %1257 = vmatpush3.bf16.msra.mxu0 %v844_v28 }
 0x48d   : > { %1258 = vmatprep.subr.bf16.mxu0 %v845_v32 }
 0x490   : > { %1259 = vmatpush3.bf16.msra.mxu0 %v845_v32 }
 0x491   : > { %1260 = vmatprep.subr.bf16.mxu0 %v846_v35 }
 0x494   : > { %1261 = vmatpush3.bf16.msra.mxu0 %v846_v35 }
 0x497   : > { %1263 = vmatmul.mubr.msk.bf16.vlgmr.msra.gmra.mrb[0].mxu0 %vm857_vm1, %v1389_v36 }
 0x56a   : > { %v1264_v37 = vpop.f32.mrb[0].mxu0 }
 0x56b   : > { %v915_v39 = vmul.f32 0.9, %v1264_v37  ;;  %v898_v40 = vpop.f32.mrb[1].mxu0 }
 0x56c   : > { %v913_v42 = vmul.f32 0.9, %v898_v40  ;;  %v1265_v43 = vpop.f32.mrb[2].mxu0 }
 0x56d   : > { %v924_v45 = vadd.f32 %v920_v38, %v915_v39  ;;  %v916_v46 = vmul.f32 0.9, %v1265_v43  ;;  %v901_v47 = vpop.f32.mrb[3].mxu0 }
 0x56e   : > { %v922_v49 = vadd.f32 %v918_v41, %v913_v42  ;;  %v914_v50 = vmul.f32 0.9, %v901_v47 }
 0x56f   : > { %929 = vst [vmem:[%s926_s5 + $0x10] sm:$0xff] %v924_v45  ;;  %933 = vst [vmem:[%s2003_s14 + $0x10] sm:$0xff] %v924_v45  ;;  %v925_v51 = vadd.f32 %v921_v44, %v916_v46 }
 0x570   : > { %927 = vst [vmem:[%s926_s5] sm:$0xff] %v922_v49  ;;  %931 = vst [vmem:[%s2003_s14] sm:$0xff] %v922_v49  ;;  %v923_v52 = vadd.f32 %v919_v48, %v914_v50 }
 0x571   : > { %930 = vst [vmem:[%s926_s5 + $0x18] sm:$0xff] %v925_v51  ;;  %934 = vst [vmem:[%s2003_s14 + $0x18] sm:$0xff] %v925_v51 }
 0x572   : > { %928 = vst [vmem:[%s926_s5 + $0x8] sm:$0xff] %v923_v52  ;;  %932 = vst [vmem:[%s2003_s14 + $0x8] sm:$0xff] %v923_v52 }
 0x573 PF: > { %s1139_s3 = sshll.u32 %s1628_s30, 9  ;;  %s2170_s25 = sld [smem:[#allocation30_spill]] }
 0x574   : > { %s949_s16 = sshll.u32 %s2003_s14, 4  ;;  %s936_s22 = scalar_lea.sflag [#allocation7], %s1974_s7  ;;  %s2064_s16 = int_to_ptr.vmem [resolvable:$true] %s949_s16 }
 0x575   : > { %s1534_s20 = scalar_lea.vmem %s2064_s16, 512  ;;  %s1655_s18 = smov [#allocation14]  }
 0x576   : > { %p1535_p0 = scmp.ne.s32.totalorder %s2064_s16, %s1534_s20  ;;  %s1538_s2 = sshll.u32 %s1655_s18, 4  ;;  %s1539_s2 = int_to_ptr.vmem [resolvable:$false] %s1538_s2 }
 0x577   : > { %s1540_s30 = scalar_lea.vmem %s1539_s2, 1024  ;;  %p1541_p1 = scmp.lt.s32.totalorder %s2064_s16, %s1539_s2 }
 0x578   : > { %p1536_p9 = pnand %p1535_p0, %p1874_p10  ;;  %p1542_p4 = scmp.lt.s32.totalorder %s1540_s30, %s1534_s20 }
 0x579   : > { %s2061_s21 = scalar_lea.hbm %s2170_s25, %s1139_s3 }
 0x57a   : > { %p1537_p11 = pneg %p1536_p9  ;;  %p1543_p8 = por %p1542_p4, %p1541_p1 }
 0x57c   : > { %p1544_p12 = pnand %p1543_p8, %p1537_p11 }
 0x57e   : > { %1547 = shalt.err (!%p1544_p12)
}
 0x57f   : > { %s1548_s14 = scalar_lea.hbm %s2061_s21, 512  ;;  %s1552_s0 = scalar_lea.hbm %s2170_s25, 1024 }
 0x580   : > { %p1549_p2 = scmp.ne.s32.totalorder %s2061_s21, %s1548_s14  ;;  %p1553_p5 = scmp.lt.u32.totalorder %s2061_s21, %s2170_s25 }
 0x581   : > { %p1554_p7 = scmp.lt.u32.totalorder %s1552_s0, %s1548_s14  ;;  %p1556_p0 = scmp.lt.u32.totalorder %s1548_s14, %s2061_s21 }
 0x582   : > { %p1550_p6 = pnand %p1549_p2, %p1874_p10 }
 0x583   : > { %p1555_p13 = por %p1554_p7, %p1553_p5 }
 0x584   : > { %p1551_p3 = pneg %p1550_p6 }
 0x585   : > { %p1557_p9 = por %p1556_p0, %p1555_p13 }
 0x587   : > { %p1558_p11 = pnand %p1557_p9, %p1551_p3 }
 0x589   : > { %1561 = shalt.err (!%p1558_p11)
}
 0x58a   : > { %s1656_s13 = smov 128   ;;  %s1657_s15 = smov 8  }
 0x58b   : > { %1282 = dma.vmem_to_hbm [thread:$0]  (%p1874_p10), %s2064_s16, 512, %s2061_s21, %s936_s22, %s1656_s13, %s1656_s13, %s1657_s15  }
 0x58c PF: > { %s2171_s9 = sld [smem:[#allocation20_spill]]  ;;  %s2172_s5 = sld [smem:[#allocation21_spill]] }
 0x58d   : > { %p1312_p1 = scmp.ge.s32.totalorder %s1644_s12, 2 }
 0x592   : > { %s964_s3 = sand.u32 1, %s2171_s9   ;;  %p2173_p4 = scmp.ne.s32.totalorder %s2172_s5, 0 }
 0x593   : > { %s965_s23 = scalar_lea.sflag [#allocation7], %s964_s3 }
 0x594   : > { %p1302_p8 = pnand %p1312_p1, %p2173_p4 }
 0x596   : > { %1611 = dma.done.wait (!%p1302_p8), %s965_s23, 512  }
 0x597   : > { %1613 = vsyncadd (!%p1302_p8), %s965_s23, 4294966784  ;;  %s28_s12 = sadd.s32 1, %s1644_s12   ;;  %s2174_s24 = smov %s2184_s27 }
 0x598   : > { %p25_p12 = scmp.ge.s32.totalorder %s28_s12, 10   ;;  %s2175_s7 = sld [smem:[#allocation22_spill]] }
 0x599   : > { %s2176_s27 = smov %s1620_s28  ;;  %s2177_s28 = smov %s1624_s29 }
 0x59a   : > { %s2178_s29 = smov %s1881_s8  ;;  %s2179_s30 = smov %s1636_s10 }
 0x59b   : > { %s2180_s9 = smov %s1640_s11  ;;  %s2181_s10 = smov %s2174_s24 }
 0x59c   :  { %27 = sbr.rel (!%p25_p12) target bundleno = 19 (0x13), region = 140 }
 0x59e   : > { %s2182_s11 = smov %s2175_s7 }
 0x5a3   :  { %970 = vsyncpa [#allocation6], 1 }
 0x5a4   :  { %972 = vsyncpa [#allocation6 + $0x1], 1 }
 0x5a5   :  { %973 = vsyncpa [#allocation9], 1 }
 0x5a6   :  { %975 = vsyncpa [#allocation9 + $0x1], 1 }
 0x5a7   :  { %976 = vsyncpa [#allocation12], 1 }
 0x5a8   :  { %977 = vsyncpa [#allocation7], 1 }
 0x5a9   :  { %979 = vsyncpa [#allocation7 + $0x1], 1 }

</bundles_post_ra>
